<compile_context>
chip_gen: v6e
topology: v6e:2x2x1
jax: 0.10.0
libtpu: 0.0.40
codegen_flags: <defaults>
</compile_context>

<pallas_src>
import jax
import jax.numpy as jnp
from jax.experimental import pallas as pl
from jax.experimental.pallas import tpu as pltpu


def _pad_prompter_kernel(x_ref, prompt_ref, o_ref):
    # Single unmasked full-block add; the (1, dblk) prompt row broadcasts over the
    # (nb, dblk) batch rows (sublane broadcast, VPU-only, no MXU/XLU work).
    o_ref[...] = x_ref[...] + prompt_ref[...]


def _build_dense_prompt(pad_left, pad_right, pad_up, pad_down, *, pad_size, image_size):
    """Assemble the four (disjoint) border strips into one dense (1, C, S, S) prompt."""
    P, S = pad_size, image_size
    C = pad_up.shape[1]
    prompt = jnp.zeros((1, C, S, S), dtype=pad_up.dtype)
    prompt = prompt.at[:, :, :P, P:S - P].add(pad_left)        # top strip
    prompt = prompt.at[:, :, S - P:, P:S - P].add(pad_right)   # bottom strip
    prompt = prompt.at[:, :, :, :P].add(pad_up)                # left column strip
    prompt = prompt.at[:, :, :, S - P:].add(pad_down)          # right column strip
    return prompt


def _vmem_capacity_bytes():
    try:
        return int(pltpu.get_tpu_info().vmem_capacity_bytes)
    except Exception:  # API unavailable -> assume the roomy 128 MiB (v5e/v6e) case
        return 128 << 20


def _tile_plan(n, d, itemsize, vmem_cap_bytes):
    """Pick (nb, dblk, vmem_limit) for the 2-D grid (cdiv(D, dblk), cdiv(N, nb))."""
    LANE = 128
    # Sub-32-bit dtypes pack along sublanes: round batch blocks accordingly.
    if itemsize >= 4:
        sub = 8
    elif itemsize == 2:
        sub = 16
    else:
        sub = 32

    # Generation-aware budgets: v7x has 64 MiB VMEM/TC, v5e/v6e have 128 MiB.
    small_vmem = vmem_cap_bytes <= (64 << 20)
    target_tile = (8 << 20) if small_vmem else (16 << 20)
    vmem_clamp = (40 << 20) if small_vmem else (96 << 20)

    cdiv = lambda a, b: -(-a // b)

    def rows_for(dblk):
        nb = max(1, target_tile // max(1, dblk * itemsize))
        if nb >= n:
            return n
        return min(n, max(sub, (nb // sub) * sub))

    # First pass: largest lane-aligned D block such that `sub` rows still fit the tile
    # budget (instead of forcing 8 rows and blowing VMEM at high resolution).
    if d % LANE != 0:
        dblk = d                      # non-lane-aligned last dim cannot be split
    else:
        per_row = max(LANE, (target_tile // (sub * itemsize)) // LANE * LANE)
        dblk = min(d, per_row)
    nb = rows_for(dblk)

    # Second pass: if the problem is non-trivial but collapses to too few grid steps
    # (e.g. inference batch 1-8), split D further so HBM reads/writes overlap with the
    # add and both v7x TensorCores get "parallel" work.
    MIN_STEPS = 4
    if (d % LANE == 0 and n * d * itemsize > (1 << 20)
            and cdiv(n, nb) * cdiv(d, dblk) < MIN_STEPS):
        d_steps = cdiv(MIN_STEPS, cdiv(n, nb))
        dblk = max(LANE, (d // d_steps) // LANE * LANE)
        nb = rows_for(dblk)

    tile_bytes = nb * dblk * itemsize
    # x tile + out tile, double-buffered, + double-buffered prompt row, + slack.
    vmem_need = 2 * 2 * tile_bytes + 2 * dblk * itemsize + (2 << 20)
    vmem_limit = int(min(max(vmem_need, 4 << 20), vmem_clamp))
    return nb, dblk, vmem_limit


def pad_prompter_forward(x, pad_left, pad_right, pad_up, pad_down,
                         *, pad_size, image_size):
    N, C, H, W = x.shape
    assert H == image_size and W == image_size

    prompt = _build_dense_prompt(pad_left, pad_right, pad_up, pad_down,
                                 pad_size=pad_size, image_size=image_size)
    D = C * H * W
    x_flat = x.reshape(N, D)
    prompt_flat = prompt.reshape(1, D).astype(x.dtype)

    itemsize = jnp.dtype(x.dtype).itemsize
    nb, dblk, vmem_limit = _tile_plan(N, D, itemsize, _vmem_capacity_bytes())
    # D axis outermost: the prompt block index stays constant across the inner batch
    # steps, so the pipeliner does not re-fetch it every grid step.
    grid = (pl.cdiv(D, dblk), pl.cdiv(N, nb))

    cost = pl.CostEstimate(
        flops=N * D,                                          # one add per element
        transcendentals=0,
        bytes_accessed=2 * N * D * itemsize + D * itemsize,   # x in + out + prompt once
    )

    out_flat = pl.pallas_call(
        _pad_prompter_kernel,
        out_shape=jax.ShapeDtypeStruct((N, D), x.dtype),
        grid=grid,
        in_specs=[
            pl.BlockSpec((nb, dblk), lambda j, i: (i, j)),
            pl.BlockSpec((1, dblk), lambda j, i: (0, j)),
        ],
        out_specs=pl.BlockSpec((nb, dblk), lambda j, i: (i, j)),
        input_output_aliases={0: 0},    # PyTorch in-place semantics; saves an HBM alloc
        cost_estimate=cost,
        compiler_params=pltpu.CompilerParams(
            dimension_semantics=("parallel", "parallel"),
            vmem_limit_bytes=vmem_limit,
        ),
    )(x_flat, prompt_flat)

    return out_flat.reshape(N, C, H, W)


def _reference(x, pad_left, pad_right, pad_up, pad_down, *, pad_size, image_size):
    P, S = pad_size, image_size
    out = x
    out = out.at[:, :, :P, P:S - P].add(pad_left)
    out = out.at[:, :, S - P:, P:S - P].add(pad_right)
    out = out.at[:, :, :, :P].add(pad_up)
    out = out.at[:, :, :, S - P:].add(pad_down)
    return out


if __name__ == "__main__":
    # Small shapes consistent with the module: channels fixed to 3, image_size=16, prompt_size=3.
    batch = 2
    channels = 3
    image_size = 16
    pad_size = 3

    key = jax.random.PRNGKey(0)
    k_x, k_l, k_r, k_u, k_d = jax.random.split(key, 5)

    x = jax.random.normal(k_x, (batch, channels, image_size, image_size), jnp.float32)
    pad_left = jax.random.normal(
        k_l, (1, channels, pad_size, image_size - 2 * pad_size), jnp.float32)
    pad_right = jax.random.normal(
        k_r, (1, channels, pad_size, image_size - 2 * pad_size), jnp.float32)
    pad_up = jax.random.normal(
        k_u, (1, channels, image_size, pad_size), jnp.float32)
    pad_down = jax.random.normal(
        k_d, (1, channels, image_size, pad_size), jnp.float32)

    ref = _reference(x, pad_left, pad_right, pad_up, pad_down,
                     pad_size=pad_size, image_size=image_size)

    out = pad_prompter_forward(x, pad_left, pad_right, pad_up, pad_down,
                               pad_size=pad_size, image_size=image_size)
    out = jax.block_until_ready(out)

    if not jnp.allclose(out, ref, atol=1e-6, rtol=1e-6):
        raise AssertionError("Pallas PadPrompter output mismatch vs reference")

    print("KERNEL_OK")
</pallas_src>

<mosaic_0001>
module attributes {stable_mosaic.version = 11 : i64} {
  func.func @_pad_prompter_kernel(%arg0: i32, %arg1: i32, %arg2: memref<2x768xf32, #tpu.memory_space<vmem>>, %arg3: memref<1x768xf32, #tpu.memory_space<vmem>>, %arg4: memref<2x768xf32, #tpu.memory_space<vmem>>) attributes {dimension_semantics = [#tpu.dimension_semantics<parallel>, #tpu.dimension_semantics<parallel>], iteration_bounds = array<i64: 1, 1>, scalar_prefetch = 0 : i64, scratch_operands = 0 : i64, tpu.core_type = #tpu.core_type<tc>, window_params = [{transform_indices = @transform_0, window_bounds = array<i64: 2, 768>}, {transform_indices = @transform_1, window_bounds = array<i64: 1, 768>}, {transform_indices = @transform_2, window_bounds = array<i64: 2, 768>}]} {
    %c0 = arith.constant 0 : index
    %c0_0 = arith.constant 0 : index
    %0 = vector.load %arg2[%c0, %c0_0] : memref<2x768xf32, #tpu.memory_space<vmem>>, vector<2x768xf32>
    %c0_1 = arith.constant 0 : index
    %c0_2 = arith.constant 0 : index
    %1 = vector.load %arg3[%c0_1, %c0_2] : memref<1x768xf32, #tpu.memory_space<vmem>>, vector<1x768xf32>
    %2 = vector.broadcast %1 : vector<1x768xf32> to vector<2x768xf32>
    %3 = arith.addf %0, %2 : vector<2x768xf32>
    %c0_3 = arith.constant 0 : index
    %c0_4 = arith.constant 0 : index
    %4 = vector.load %arg4[%c0_3, %c0_4] : memref<2x768xf32, #tpu.memory_space<vmem>>, vector<2x768xf32>
    tpu.vector_store %arg4[%c0_3, %c0_4], %3 {strides = array<i32>} : memref<2x768xf32, #tpu.memory_space<vmem>>, vector<2x768xf32>,
    return
  }
  func.func @transform_0(%arg0: i32, %arg1: i32) -> (i32, i32) {
    %c0_i32 = arith.constant 0 : i32
    return %arg1, %arg0 : i32, i32
  }
  func.func @transform_1(%arg0: i32, %arg1: i32) -> (i32, i32) {
    %c0_i32 = arith.constant 0 : i32
    %c0_i32_0 = arith.constant 0 : i32
    return %c0_i32, %arg0 : i32, i32
  }
  func.func @transform_2(%arg0: i32, %arg1: i32) -> (i32, i32) {
    %c0_i32 = arith.constant 0 : i32
    return %arg1, %arg0 : i32, i32
  }
}

</mosaic_0001>

<bundles_post_ra>
// kernel: tpu_custom_call.1
= control target key start
LH: loop header
LB: loop body
LE: loop exit
PB: predicated region body
PF: predicated region fallthrough
CT: control target
= control target key end

     0   :  { %7 = vsyncpa [#allocation3], 0  ;;  %s172_s0 = inlined_call_operand.hbm [shape: f32[2,768], index: 0, kind: input, shape index: {}, may-alias: {0,2}]   ;;  %s173_s1 = inlined_call_operand.vmem [shape: f32[1,768], index: 1, kind: input, shape index: {}]   ;;  %s174_s2 = inlined_call_operand.hbm [shape: f32[2,768], index: 2, kind: output, shape index: {}, may-alias: {0,2}]  }
   0x1   :  { %8 = vsyncpa [#allocation4], 0  ;;  %s145_s9 = smov [#allocation2]  }
   0x2   :  { %s15_s10 = sshll.u32 %s145_s9, 4  ;;  %s16_s10 = int_to_ptr.vmem [resolvable:$true] %s15_s10 }
   0x3   :  { %s109_s11 = scalar_lea.vmem %s16_s10, 192  ;;  %p114_p1 = scmp.lt.s32.totalorder %s16_s10, %s16_s10 }
   0x4   :  { %p110_p0 = scmp.ne.s32.totalorder %s16_s10, %s109_s11  ;;  %p115_p2 = scmp.lt.s32.totalorder %s109_s11, %s109_s11 }
   0x6   :  { %p116_p3 = por %p115_p2, %p114_p1 }
   0x8   :  { %p117_p4 = pnand %p116_p3, %p110_p0 }
   0xa   :  { %120 = shalt.err (!%p117_p4)
}
   0xb   :  { %18 = dma.hbm_to_vmem [thread:$0]  %s172_s0, 192, %s16_s10, [#allocation3]  }
   0xc   :  { %141 = dma.done.wait [#allocation3], 192  }
   0xd   :  { %142 = vsyncadd [#allocation3], 4294967104  ;;  %v28_v0 = vlaneseq  ;;  %v146_v1 = vmov 1983009808   ;;  %v26_v11 = vld [vmem:[%s173_s1] sm:$0x3f] }
   0xe   :  { %v55_v2 = vunpack.c.l.s4 %v146_v1  ;;  %v25_v24 = vld [vmem:[#allocation2 + $0x8] sm:$0xf]  ;;  %v24_v25 = vld [vmem:[#allocation2] sm:$0xff]  ;;  %s147_s0 = smov [#allocation5]  }
   0xf   :  { %v29_v3 = vshrl.u32 %v28_v0, 7  ;;  %s89_s16 = sshll.u32 %s147_s0, 4  ;;  %s90_s16 = int_to_ptr.vmem [resolvable:$true] %s89_s16 }
  0x10   :  { %v56_v4 = vunpack.c.0.s8 %v55_v2  ;;  %s121_s1 = scalar_lea.vmem %s90_s16, 192  ;;  %p126_p6 = scmp.lt.s32.totalorder %s90_s16, %s90_s16 }
  0x11   :  { %v30_v5 = vsub.s32 0, %v29_v3  ;;  %v34_v6 = vsub.s32 1, %v29_v3  ;;  %v38_v7 = vsub.s32 2, %v29_v3  ;;  %v42_v8 = vsub.s32 3, %v29_v3  ;;  %p122_p5 = scmp.ne.s32.totalorder %s90_s16, %s121_s1  ;;  %p127_p7 = scmp.lt.s32.totalorder %s121_s1, %s121_s1 }
  0x12   :  { %v46_v9 = vsub.s32 4, %v29_v3  ;;  %v50_v10 = vsub.s32 5, %v29_v3  ;;  %v59_v12 = vsub.s32 %v56_v4, %v29_v3 }
  0x13   :  { %v31_v13 = vrot.slane %v26_v11, %v30_v5  ;;  %v35_v14 = vrot.slane %v26_v11, %v34_v6  ;;  %v39_v15 = vrot.slane %v26_v11, %v38_v7  ;;  %v43_v16 = vrot.slane %v26_v11, %v42_v8  ;;  %p128_p8 = por %p127_p7, %p126_p6 }
  0x14   :  { %v47_v17 = vrot.slane %v26_v11, %v46_v9  ;;  %v51_v18 = vrot.slane %v26_v11, %v50_v10 }
  0x15   :  { %v52_v19 = vcombine.low %v31_v13, %v35_v14  ;;  %v53_v20 = vcombine.low %v39_v15, %v43_v16  ;;  %p129_p9 = pnand %p128_p8, %p122_p5 }
  0x16   :  { %v69_v21 = vcombine.low %v47_v17, %v51_v18 }
  0x17   :  { %v60_v22 = vrot.slane %v52_v19, %v59_v12  ;;  %v67_v23 = vrot.slane %v53_v20, %v59_v12 }
  0x18   :  { %v76_v26 = vrot.slane %v69_v21, %v59_v12 }
  0x19   :  { %v68_v27 = vcombine.low %v60_v22, %v67_v23 }
  0x1a   :  { %v80_v28 = vadd.f32 %v76_v26, %v25_v24 }
  0x1b   :  { %v79_v29 = vadd.f32 %v68_v27, %v24_v25 }
  0x1c   :  { %82 = vst [vmem:[#allocation5 + $0x8] sm:$0xf] %v80_v28 }
  0x1d   :  { %81 = vst [vmem:[#allocation5] sm:$0xff] %v79_v29 }
  0x1e   :  { %132 = shalt.err (!%p129_p9)
}
  0x1f   :  { %92 = dma.vmem_to_hbm [thread:$0]  %s90_s16, 192, %s174_s2, [#allocation4]  }
  0x20   :  { %143 = dma.done.wait [#allocation4], 192  }
  0x21   :  { %144 = vsyncadd [#allocation4], 4294967104 }
  0x22   :  { %96 = vsyncpa [#allocation3], 1 }
  0x23   :  { %97 = vsyncpa [#allocation4], 1 }

</bundles_post_ra>
